<compile_context>
chip_gen: v7x
topology: tpu7x:2x2x1
jax: 0.10.0
libtpu: 0.0.40
codegen_flags: <defaults>
</compile_context>

<pallas_src>
import jax
import jax.numpy as jnp
from jax.experimental import pallas as pl
from jax.experimental.pallas import tpu as pltpu


def correction_fn(expansion_ratio: float, d_model: int) -> int:
    return int((expansion_ratio * d_model + 255) // 256 * 256)


def _round_up(x: int, m: int) -> int:
    return ((x + m - 1) // m) * m


# ---------------------------------------------------------------------------
# Kernels
# ---------------------------------------------------------------------------

_H_CHUNK = 512  # static inner hidden chunk: bounds the live f32 intermediate


def _mlp_partial(x_ref, wup_ref, wdown_ref):
    """f32 partial result relu(x @ WupT)^2 @ WdownT for this (m, h) block.

    Both matmuls are canonical [M,K]x[K,N] (weights pre-transposed once in the
    wrapper).  The block's hidden axis is walked in static _H_CHUNK slices
    (zero-cost ref views) so the f32 intermediate and its cast copy stay close
    to vreg capacity instead of spilling when tm/th are large.
    """
    cdt = x_ref.dtype
    th = wup_ref.shape[1]
    acc = None
    for c0 in range(0, th, _H_CHUNK):
        c1 = min(c0 + _H_CHUNK, th)
        h = jnp.dot(x_ref[...], wup_ref[:, c0:c1],
                    preferred_element_type=jnp.float32)
        h = jnp.maximum(h, 0.0)
        h = h * h
        part = jnp.dot(h.astype(cdt), wdown_ref[c0:c1, :],
                       preferred_element_type=jnp.float32)
        acc = part if acc is None else acc + part
    return acc


def mlp_kernel_out(x_ref, wup_ref, wdown_ref, o_ref):
    """f32 output: accumulate straight into o_ref (VMEM-resident across h)."""
    part = _mlp_partial(x_ref, wup_ref, wdown_ref)
    h_idx = pl.program_id(1)

    @pl.when(h_idx == 0)
    def _init():
        o_ref[...] = part

    @pl.when(h_idx > 0)
    def _accum():
        o_ref[...] += part


def mlp_kernel_acc(x_ref, wup_ref, wdown_ref, o_ref, acc_ref):
    """Non-f32 output: f32 scratch accumulator, cast once at the last h step."""
    h_idx = pl.program_id(1)

    @pl.when(h_idx == 0)
    def _init():
        acc_ref[...] = jnp.zeros_like(acc_ref)

    acc_ref[...] += _mlp_partial(x_ref, wup_ref, wdown_ref)

    @pl.when(h_idx == pl.num_programs(1) - 1)
    def _finalize():
        o_ref[...] = acc_ref[...].astype(o_ref.dtype)


# ---------------------------------------------------------------------------
# Tile planning
# ---------------------------------------------------------------------------

def _vmem_budget_bytes() -> int:
    """Per-TensorCore VMEM budget by generation."""
    cap = 64 << 20
    try:
        cap = int(pltpu.get_tpu_info().vmem_capacity_bytes)
    except Exception:  # older jax / query unavailable: stay conservative
        pass
    if cap >= (96 << 20):
        return 100 << 20          # v5e / v6e: use most of the 128 MiB
    return 48 << 20               # v7x: 64 MiB per TC, leave compiler headroom


def _footprint_bytes(tm, th, D, cb, ob, use_acc, w_buf=2):
    """Real per-core VMEM footprint of one tile plan."""
    b = 2 * tm * D * cb           # x block (double-buffered)
    b += 2 * tm * D * ob          # out block (double-buffered)
    b += w_buf * D * th * cb      # up-weight block(s)
    b += w_buf * th * D * cb      # down-weight block(s)
    if use_acc:
        b += tm * D * 4           # f32 accumulator scratch
    hc = min(th, _H_CHUNK)
    b += tm * hc * (4 + cb)       # live f32 intermediate + its cast copy
    return b


def _plan_tiles(M, D, H, cb, ob, use_acc, budget):
    sub = {4: 8, 2: 16, 1: 32}[cb]
    headroom = 2 << 20
    m_cap = _round_up(M, sub)

    def fits(tm, th):
        return _footprint_bytes(tm, th, D, cb, ob, use_acc) + headroom <= budget

    tm_cands = sorted({min(t, m_cap) for t in
                       (8192, 4096, 3072, 2048, 1536, 1024, 768, 512, 384,
                        256, 192, 128, 96, 64, 32, 16, 8) if t % sub == 0},
                      reverse=True)
    # Hidden tiles prefer multiples of 256 (2x256^2 MXU on v6e/v7x, also fine
    # on v5e), fall back to 128, else keep an odd hidden dim whole.
    gran = 256 if H % 256 == 0 else (128 if H % 128 == 0 else 0)
    th_cands = [t for t in range(H, 0, -gran) if H % t == 0] if gran else [H]

    tm_floor = min(_round_up(256, sub), m_cap)
    if fits(tm_floor, H):
        # Whole-H weight residency: constant weight index_map -> weights DMA'd
        # from HBM exactly once; tm then only amortizes per-step overhead.
        th = H
        tm = next((t for t in tm_cands if fits(t, H)), tm_cands[-1])
    else:
        # Weights are re-streamed once per row tile: maximize tm first
        # (arithmetic intensity vs weight traffic is 2*tm/itemsize), then th.
        tm, th = tm_cands[-1], th_cands[-1]
        for t_m in tm_cands:
            t_h = next((t for t in th_cands if fits(t_m, t)), None)
            if t_h is not None:
                tm, th = t_m, t_h
                break

    # v7x megacore: keep >= 2 row tiles so the 'parallel' m axis can split
    # across the two TensorCores (only relevant once M is large).
    if M >= 1024 and _round_up(M, tm) // tm == 1:
        tm = _round_up(-(-M // 2), sub)
    return tm, th


# ---------------------------------------------------------------------------
# pallas_call wrapper
# ---------------------------------------------------------------------------

def mlp_pallas(x2d, wupT, wdownT, out_dtype, *, tm=None, th=None):
    """x2d: [M, D] (compute dtype); wupT: [D, H]; wdownT: [H, D]."""
    M, D = x2d.shape
    Dw, H = wupT.shape
    assert Dw == D and wdownT.shape == (H, D)

    cb = x2d.dtype.itemsize
    ob = jnp.dtype(out_dtype).itemsize
    sub = {4: 8, 2: 16, 1: 32}[cb]
    use_acc = jnp.dtype(out_dtype) != jnp.dtype(jnp.float32)
    budget = _vmem_budget_bytes()

    tm_auto, th_auto = _plan_tiles(M, D, H, cb, ob, use_acc, budget)
    tm = tm_auto if tm is None else tm
    th = th_auto if th is None else th

    tm = max(sub, _round_up(min(tm, _round_up(M, sub)), sub))
    if H % th != 0:
        th = H
    Mp = _round_up(M, tm)
    if Mp != M:
        x2d = jnp.pad(x2d, ((0, Mp - M), (0, 0)))   # padded rows compute zeros
    num_m, num_h = Mp // tm, H // th

    fp = _footprint_bytes(tm, th, D, cb, ob, use_acc)
    vmem_limit = int(min(budget, max(fp + (4 << 20), 32 << 20)))

    weight_reads = 1 if num_h == 1 else num_m       # restream factor if tiled H
    cost = pl.CostEstimate(
        flops=4 * Mp * D * H,                        # two MXU matmuls
        transcendentals=0,
        bytes_accessed=int(Mp * D * cb + Mp * D * ob
                           + weight_reads * 2 * D * H * cb))

    kernel = mlp_kernel_acc if use_acc else mlp_kernel_out
    scratch = [pltpu.VMEM((tm, D), jnp.float32)] if use_acc else []

    def build(single_buffer_weights):
        wkw = dict(pipeline_mode=pl.Buffered(1)) if single_buffer_weights else {}
        grid_spec = pltpu.PrefetchScalarGridSpec(
            num_scalar_prefetch=0,
            grid=(num_m, num_h),
            in_specs=[
                pl.BlockSpec((tm, D), lambda i, h: (i, 0)),           # x rows
                pl.BlockSpec((D, th), (lambda i, h: (0, h)), **wkw),  # up.T   [D, H]
                pl.BlockSpec((th, D), (lambda i, h: (h, 0)), **wkw),  # down.T [H, D]
            ],
            out_specs=pl.BlockSpec((tm, D), lambda i, h: (i, 0)),
            scratch_shapes=scratch,
        )
        return pl.pallas_call(
            kernel,
            out_shape=jax.ShapeDtypeStruct((Mp, D), out_dtype),
            grid_spec=grid_spec,
            compiler_params=pltpu.CompilerParams(
                dimension_semantics=("parallel", "arbitrary"),
                vmem_limit_bytes=vmem_limit),
            cost_estimate=cost,
        )

    args = (x2d, wupT, wdownT)
    if num_h == 1:
        # Constant weight index_map -> single-buffer the weight blocks (halves
        # weight VMEM, matters most on v7x).  Fall back to default
        # double-buffering if this jax build rejects pipeline_mode/Buffered(1).
        try:
            out = build(True)(*args)
        except Exception:
            out = build(False)(*args)
    else:
        out = build(False)(*args)

    return out[:M] if Mp != M else out


def prepare_weights(wup, wdown, compute_dtype):
    """One-time param prep: cast to the compute dtype and store in [K, N] layout.

    up.weight [H, D] -> [D, H]; down.weight [D, H] -> [H, D].  Doing this once
    at parameter-prep time keeps both in-kernel matmuls in the canonical
    non-transposed layout and avoids a per-forward weight cast/transpose.
    """
    cdt = jnp.dtype(compute_dtype)
    return jnp.asarray(wup, cdt).T, jnp.asarray(wdown, cdt).T


def mlp_forward(x, wup, wdown, *, compute_dtype=None, tm=None, th=None):
    """x: [B, S, D]; wup: [H, D]; wdown: [D, H] (PyTorch Linear layout).

    Output dtype matches x.dtype (as in the module, which casts weights to
    x.dtype).  compute_dtype=jnp.bfloat16 optionally runs both matmuls in bf16
    (f32 MXU accumulation) when x arrives as f32.
    """
    B, S, D = x.shape
    cdt = jnp.dtype(compute_dtype) if compute_dtype is not None else x.dtype
    # TODO(synk): in a real model, call prepare_weights once at init and reuse
    # the transposed/cast copies instead of re-deriving them every forward.
    wupT, wdownT = prepare_weights(wup, wdown, cdt)
    out2d = mlp_pallas(x.reshape(B * S, D).astype(cdt), wupT, wdownT,
                       out_dtype=x.dtype, tm=tm, th=th)
    return out2d.reshape(B, S, D)


def _reference(x, wup, wdown):
    h = jnp.maximum(x @ wup.T, 0.0) ** 2
    return h @ wdown.T


if __name__ == "__main__":
    key = jax.random.PRNGKey(0)
    k1, k2, k3, k4, k5, k6 = jax.random.split(key, 6)

    # --- test 1: module's shape (dim=128, expansion 2.0 -> hidden=256) ---
    dim = 128
    hidden = correction_fn(2.0, dim)              # 256
    batch, seq = 2, 8
    x = jax.random.normal(k1, (batch, seq, dim), dtype=jnp.float32)
    wup = jax.random.normal(k2, (hidden, dim), dtype=jnp.float32) * 0.02
    # The PyTorch module zero-inits down.weight; small random values are used
    # here so the kernel compute path is actually exercised / verifiable.
    wdown = jax.random.normal(k3, (dim, hidden), dtype=jnp.float32) * 0.02

    out = jax.block_until_ready(mlp_forward(x, wup, wdown))
    ref = _reference(x, wup, wdown)
    assert jnp.allclose(out, ref, atol=1e-4, rtol=1e-4), "mismatch (test 1)"

    # --- test 1b: optional bf16 compute path on f32 inputs ---
    out1b = jax.block_until_ready(
        mlp_forward(x, wup, wdown, compute_dtype=jnp.bfloat16))
    assert jnp.allclose(out1b, ref, atol=5e-3, rtol=1e-1), "mismatch (test 1b)"

    # --- test 2: ragged M + forced multi-tile grid (padding + h accumulation) ---
    dim2 = 128
    hidden2 = correction_fn(4.0, dim2)            # 512
    b2, s2 = 3, 11                                # M = 33 -> padded to 48
    x2 = jax.random.normal(k4, (b2, s2, dim2), dtype=jnp.float32)
    wup2 = jax.random.normal(k5, (hidden2, dim2), dtype=jnp.float32) * 0.02
    wdown2 = jax.random.normal(k6, (dim2, hidden2), dtype=jnp.float32) * 0.02

    out2 = jax.block_until_ready(mlp_forward(x2, wup2, wdown2, tm=16, th=128))
    ref2 = _reference(x2, wup2, wdown2)
    assert jnp.allclose(out2, ref2, atol=1e-4, rtol=1e-4), "mismatch (test 2)"

    # --- test 3: bf16 activations (exercises the f32-scratch-accumulator kernel) ---
    x3 = jax.random.normal(k1, (2, 16, dim), dtype=jnp.float32).astype(jnp.bfloat16)
    out3 = jax.block_until_ready(mlp_forward(x3, wup, wdown))
    ref3 = _reference(x3.astype(jnp.float32),
                      wup.astype(jnp.bfloat16).astype(jnp.float32),
                      wdown.astype(jnp.bfloat16).astype(jnp.float32))
    assert jnp.allclose(out3.astype(jnp.float32), ref3,
                        atol=2e-3, rtol=5e-2), "mismatch (test 3)"

    print("KERNEL_OK")
</pallas_src>

<mosaic_0001>
module attributes {stable_mosaic.version = 11 : i64} {
  func.func @mlp_kernel_out(%arg0: i32, %arg1: i32, %arg2: memref<16x128xf32, #tpu.memory_space<vmem>>, %arg3: memref<128x256xf32, #tpu.memory_space<vmem>>, %arg4: memref<256x128xf32, #tpu.memory_space<vmem>>, %arg5: memref<16x128xf32, #tpu.memory_space<vmem>>) attributes {dimension_semantics = [#tpu.dimension_semantics<parallel>, #tpu.dimension_semantics<arbitrary>], iteration_bounds = array<i64: 1, 1>, scalar_prefetch = 0 : i64, scratch_operands = 0 : i64, tpu.core_type = #tpu.core_type<tc>, window_params = [{transform_indices = @transform_0, window_bounds = array<i64: 16, 128>}, {pipeline_mode = #tpu.pipeline_mode<synchronous>, transform_indices = @transform_1, window_bounds = array<i64: 128, 256>}, {pipeline_mode = #tpu.pipeline_mode<synchronous>, transform_indices = @transform_2, window_bounds = array<i64: 256, 128>}, {transform_indices = @transform_3, window_bounds = array<i64: 16, 128>}]} {
    %c0 = arith.constant 0 : index
    %c0_0 = arith.constant 0 : index
    %0 = vector.load %arg2[%c0, %c0_0] : memref<16x128xf32, #tpu.memory_space<vmem>>, vector<16x128xf32>
    %c0_1 = arith.constant 0 : index
    %c0_2 = arith.constant 0 : index
    %1 = vector.load %arg3[%c0_1, %c0_2] : memref<128x256xf32, #tpu.memory_space<vmem>>, vector<128x256xf32>
    %cst = arith.constant dense<0.000000e+00> : vector<16x256xf32>
    %2 = tpu.matmul %0, %1, %cst {dimension_numbers = #tpu.dot_dimension_numbers<[1], [0], [0], [1], [0, 0, 1, 1], [], []>} : vector<16x128xf32>, vector<128x256xf32>, vector<16x256xf32> -> vector<16x256xf32>
    %cst_3 = arith.constant 0.000000e+00 : f32
    %3 = vector.broadcast %cst_3 : f32 to vector<16x256xf32>
    %4 = arith.maximumf %2, %3 : vector<16x256xf32>
    %5 = arith.mulf %4, %4 : vector<16x256xf32>
    %c0_4 = arith.constant 0 : index
    %c0_5 = arith.constant 0 : index
    %6 = vector.load %arg4[%c0_4, %c0_5] : memref<256x128xf32, #tpu.memory_space<vmem>>, vector<256x128xf32>
    %cst_6 = arith.constant dense<0.000000e+00> : vector<16x128xf32>
    %7 = tpu.matmul %5, %6, %cst_6 {dimension_numbers = #tpu.dot_dimension_numbers<[1], [0], [0], [1], [0, 0, 1, 1], [], []>} : vector<16x256xf32>, vector<256x128xf32>, vector<16x128xf32> -> vector<16x128xf32>
    %c0_i32 = arith.constant 0 : i32
    %8 = arith.cmpi eq, %arg1, %c0_i32 : i32
    %9 = arith.extui %8 : i1 to i32
    %c0_i32_7 = arith.constant 0 : i32
    %10 = arith.cmpi ne, %9, %c0_i32_7 : i32
    scf.if %10 {
      %c0_10 = arith.constant 0 : index
      %c0_11 = arith.constant 0 : index
      %14 = vector.load %arg5[%c0_10, %c0_11] : memref<16x128xf32, #tpu.memory_space<vmem>>, vector<16x128xf32>
      tpu.vector_store %arg5[%c0_10, %c0_11], %7 {strides = array<i32>} : memref<16x128xf32, #tpu.memory_space<vmem>>, vector<16x128xf32>,
    } else {
    }
    %c0_i32_8 = arith.constant 0 : i32
    %11 = arith.cmpi sgt, %arg1, %c0_i32_8 : i32
    %12 = arith.extui %11 : i1 to i32
    %c0_i32_9 = arith.constant 0 : i32
    %13 = arith.cmpi ne, %12, %c0_i32_9 : i32
    scf.if %13 {
      %c0_10 = arith.constant 0 : index
      %c0_11 = arith.constant 0 : index
      %14 = vector.load %arg5[%c0_10, %c0_11] : memref<16x128xf32, #tpu.memory_space<vmem>>, vector<16x128xf32>
      %15 = arith.addf %14, %7 : vector<16x128xf32>
      %c0_12 = arith.constant 0 : index
      %c0_13 = arith.constant 0 : index
      %16 = vector.load %arg5[%c0_12, %c0_13] : memref<16x128xf32, #tpu.memory_space<vmem>>, vector<16x128xf32>
      tpu.vector_store %arg5[%c0_12, %c0_13], %15 {strides = array<i32>} : memref<16x128xf32, #tpu.memory_space<vmem>>, vector<16x128xf32>,
    } else {
    }
    return
  }
  func.func @transform_0(%arg0: i32, %arg1: i32) -> (i32, i32) {
    %c0_i32 = arith.constant 0 : i32
    %c0_i32_0 = arith.constant 0 : i32
    return %arg0, %c0_i32 : i32, i32
  }
  func.func @transform_1(%arg0: i32, %arg1: i32) -> (i32, i32) {
    %c0_i32 = arith.constant 0 : i32
    %c0_i32_0 = arith.constant 0 : i32
    return %c0_i32, %arg1 : i32, i32
  }
  func.func @transform_2(%arg0: i32, %arg1: i32) -> (i32, i32) {
    %c0_i32 = arith.constant 0 : i32
    %c0_i32_0 = arith.constant 0 : i32
    return %arg1, %c0_i32 : i32, i32
  }
  func.func @transform_3(%arg0: i32, %arg1: i32) -> (i32, i32) {
    %c0_i32 = arith.constant 0 : i32
    %c0_i32_0 = arith.constant 0 : i32
    return %arg0, %c0_i32 : i32, i32
  }
}

module attributes {stable_mosaic.version = 11 : i64} {
  func.func @mlp_kernel_out(%arg0: i32, %arg1: i32, %arg2: memref<16x128xf32, #tpu.memory_space<vmem>>, %arg3: memref<128x256xf32, #tpu.memory_space<vmem>>, %arg4: memref<256x128xf32, #tpu.memory_space<vmem>>, %arg5: memref<16x128xf32, #tpu.memory_space<vmem>>) attributes {dimension_semantics = [#tpu.dimension_semantics<parallel>, #tpu.dimension_semantics<arbitrary>], iteration_bounds = array<i64: 1, 1>, scalar_prefetch = 0 : i64, scratch_operands = 0 : i64, tpu.core_type = #tpu.core_type<tc>, window_params = [{transform_indices = @transform_0, window_bounds = array<i64: 16, 128>}, {transform_indices = @transform_1, window_bounds = array<i64: 128, 256>}, {transform_indices = @transform_2, window_bounds = array<i64: 256, 128>}, {transform_indices = @transform_3, window_bounds = array<i64: 16, 128>}]} {
    %c0 = arith.constant 0 : index
    %c0_0 = arith.constant 0 : index
    %0 = vector.load %arg2[%c0, %c0_0] : memref<16x128xf32, #tpu.memory_space<vmem>>, vector<16x128xf32>
    %c0_1 = arith.constant 0 : index
    %c0_2 = arith.constant 0 : index
    %1 = vector.load %arg3[%c0_1, %c0_2] : memref<128x256xf32, #tpu.memory_space<vmem>>, vector<128x256xf32>
    %cst = arith.constant dense<0.000000e+00> : vector<16x256xf32>
    %2 = tpu.matmul %0, %1, %cst {dimension_numbers = #tpu.dot_dimension_numbers<[1], [0], [0], [1], [0, 0, 1, 1], [], []>} : vector<16x128xf32>, vector<128x256xf32>, vector<16x256xf32> -> vector<16x256xf32>
    %cst_3 = arith.constant 0.000000e+00 : f32
    %3 = vector.broadcast %cst_3 : f32 to vector<16x256xf32>
    %4 = arith.maximumf %2, %3 : vector<16x256xf32>
    %5 = arith.mulf %4, %4 : vector<16x256xf32>
    %c0_4 = arith.constant 0 : index
    %c0_5 = arith.constant 0 : index
    %6 = vector.load %arg4[%c0_4, %c0_5] : memref<256x128xf32, #tpu.memory_space<vmem>>, vector<256x128xf32>
    %cst_6 = arith.constant dense<0.000000e+00> : vector<16x128xf32>
    %7 = tpu.matmul %5, %6, %cst_6 {dimension_numbers = #tpu.dot_dimension_numbers<[1], [0], [0], [1], [0, 0, 1, 1], [], []>} : vector<16x256xf32>, vector<256x128xf32>, vector<16x128xf32> -> vector<16x128xf32>
    %c0_i32 = arith.constant 0 : i32
    %8 = arith.cmpi eq, %arg1, %c0_i32 : i32
    %9 = arith.extui %8 : i1 to i32
    %c0_i32_7 = arith.constant 0 : i32
    %10 = arith.cmpi ne, %9, %c0_i32_7 : i32
    scf.if %10 {
      %c0_10 = arith.constant 0 : index
      %c0_11 = arith.constant 0 : index
      %14 = vector.load %arg5[%c0_10, %c0_11] : memref<16x128xf32, #tpu.memory_space<vmem>>, vector<16x128xf32>
      tpu.vector_store %arg5[%c0_10, %c0_11], %7 {strides = array<i32>} : memref<16x128xf32, #tpu.memory_space<vmem>>, vector<16x128xf32>,
    } else {
    }
    %c0_i32_8 = arith.constant 0 : i32
    %11 = arith.cmpi sgt, %arg1, %c0_i32_8 : i32
    %12 = arith.extui %11 : i1 to i32
    %c0_i32_9 = arith.constant 0 : i32
    %13 = arith.cmpi ne, %12, %c0_i32_9 : i32
    scf.if %13 {
      %c0_10 = arith.constant 0 : index
      %c0_11 = arith.constant 0 : index
      %14 = vector.load %arg5[%c0_10, %c0_11] : memref<16x128xf32, #tpu.memory_space<vmem>>, vector<16x128xf32>
      %15 = arith.addf %14, %7 : vector<16x128xf32>
      %c0_12 = arith.constant 0 : index
      %c0_13 = arith.constant 0 : index
      %16 = vector.load %arg5[%c0_12, %c0_13] : memref<16x128xf32, #tpu.memory_space<vmem>>, vector<16x128xf32>
      tpu.vector_store %arg5[%c0_12, %c0_13], %15 {strides = array<i32>} : memref<16x128xf32, #tpu.memory_space<vmem>>, vector<16x128xf32>,
    } else {
    }
    return
  }
  func.func @transform_0(%arg0: i32, %arg1: i32) -> (i32, i32) {
    %c0_i32 = arith.constant 0 : i32
    %c0_i32_0 = arith.constant 0 : i32
    return %arg0, %c0_i32 : i32, i32
  }
  func.func @transform_1(%arg0: i32, %arg1: i32) -> (i32, i32) {
    %c0_i32 = arith.constant 0 : i32
    %c0_i32_0 = arith.constant 0 : i32
    return %c0_i32, %arg1 : i32, i32
  }
  func.func @transform_2(%arg0: i32, %arg1: i32) -> (i32, i32) {
    %c0_i32 = arith.constant 0 : i32
    %c0_i32_0 = arith.constant 0 : i32
    return %arg1, %c0_i32 : i32, i32
  }
  func.func @transform_3(%arg0: i32, %arg1: i32) -> (i32, i32) {
    %c0_i32 = arith.constant 0 : i32
    %c0_i32_0 = arith.constant 0 : i32
    return %arg0, %c0_i32 : i32, i32
  }
}

</mosaic_0001>

<bundles_post_ra>
// kernel: tpu_custom_call.1
= control target key start
LH: loop header
LB: loop body
LE: loop exit
PB: predicated region body
PF: predicated region fallthrough
CT: control target
= control target key end

     0   :  { %8 = vsyncpa [#allocation3], 0  ;;  %s609_s0 = inlined_call_operand.hbm [shape: f32[16,128], index: 0, kind: input, shape index: {}]   ;;  %s610_s1 = inlined_call_operand.hbm [shape: f32[128,256], index: 1, kind: input, shape index: {}]   ;;  %s611_s2 = inlined_call_operand.hbm [shape: f32[256,128], index: 2, kind: input, shape index: {}]   ;;  %s612_s3 = inlined_call_operand.hbm [shape: f32[16,128], index: 3, kind: output, shape index: {}]  }
   0x1   :  { %9 = vsyncpa [#allocation6], 0 }
   0x2   :  { %10 = vsyncpa [#allocation4], 0  ;;  %s521_s12 = smov [#allocation5]   ;;  %s427_s16 = scalar_lea.hbm %s610_s1, 4096 }
   0x3   :  { %s28_s13 = sshll.u32 %s521_s12, 4  ;;  %p428_p0 = scmp.ne.s32.totalorder %s610_s1, %s427_s16  ;;  %s29_s13 = int_to_ptr.vmem [resolvable:$true] %s28_s13 }
   0x4   :  { %p431_p1 = scmp.lt.u32.totalorder %s427_s16, %s610_s1 }
   0x6   :  { %p433_p2 = pnand %p431_p1, %p428_p0 }
   0x8   :  { %436 = shalt.err (!%p433_p2)
}
   0x9   :  { %s437_s21 = scalar_lea.vmem %s29_s13, 4096  ;;  %p442_p4 = scmp.lt.s32.totalorder %s29_s13, %s29_s13 }
   0xa   :  { %p438_p3 = scmp.ne.s32.totalorder %s29_s13, %s437_s21  ;;  %p443_p5 = scmp.lt.s32.totalorder %s437_s21, %s437_s21 }
   0xc   :  { %p444_p6 = por %p443_p5, %p442_p4 }
   0xe   :  { %p445_p7 = pnand %p444_p6, %p438_p3 }
  0x10   :  { %448 = shalt.err (!%p445_p7)
}
  0x11   :  { %s522_s22 = smov 256   ;;  %s523_s23 = smov 16  }
  0x12   :  { %34 = dma.hbm_to_vmem [thread:$0]  %s610_s1, 4096, %s29_s13, [#allocation6], %s522_s22, %s522_s22, %s523_s23  }
  0x13   :  { %s524_s26 = smov [#allocation2]   ;;  %s449_s30 = scalar_lea.hbm %s609_s0, 256 }
  0x14   :  { %s16_s27 = sshll.u32 %s524_s26, 4  ;;  %p450_p8 = scmp.ne.s32.totalorder %s609_s0, %s449_s30  ;;  %s17_s27 = int_to_ptr.vmem [resolvable:$true] %s16_s27 }
  0x15   :  { %p453_p9 = scmp.lt.u32.totalorder %s449_s30, %s609_s0 }
  0x17   :  { %p455_p10 = pnand %p453_p9, %p450_p8 }
  0x19   :  { %458 = shalt.err (!%p455_p10)
}
  0x1a   :  { %s459_s8 = scalar_lea.vmem %s17_s27, 256  ;;  %p464_p12 = scmp.lt.s32.totalorder %s17_s27, %s17_s27 }
  0x1b   :  { %p460_p11 = scmp.ne.s32.totalorder %s17_s27, %s459_s8  ;;  %p465_p13 = scmp.lt.s32.totalorder %s459_s8, %s459_s8 }
  0x1d   :  { %p466_p0 = por %p465_p13, %p464_p12 }
  0x1f   :  { %p467_p1 = pnand %p466_p0, %p460_p11 }
  0x21   :  { %470 = shalt.err (!%p467_p1)
}
  0x22   :  { %s525_s1 = smov 128   ;;  %s526_s9 = smov 8  }
  0x23   :  { %22 = dma.hbm_to_vmem [thread:$0]  %s609_s0, 256, %s17_s27, [#allocation3], %s525_s1, %s525_s1, %s526_s9  }
  0x24   :  { %s527_s12 = smov [#allocation7]   ;;  %s471_s16 = scalar_lea.hbm %s611_s2, 4096 }
  0x25   :  { %s40_s13 = sshll.u32 %s527_s12, 4  ;;  %p472_p2 = scmp.ne.s32.totalorder %s611_s2, %s471_s16  ;;  %s41_s13 = int_to_ptr.vmem [resolvable:$true] %s40_s13 }
  0x26   :  { %p475_p3 = scmp.lt.u32.totalorder %s471_s16, %s611_s2 }
  0x28   :  { %p477_p4 = pnand %p475_p3, %p472_p2 }
  0x2a   :  { %480 = shalt.err (!%p477_p4)
}
  0x2b   :  { %s481_s21 = scalar_lea.vmem %s41_s13, 4096  ;;  %p486_p6 = scmp.lt.s32.totalorder %s41_s13, %s41_s13 }
  0x2c   :  { %p482_p5 = scmp.ne.s32.totalorder %s41_s13, %s481_s21  ;;  %p487_p7 = scmp.lt.s32.totalorder %s481_s21, %s481_s21 }
  0x2e   :  { %p488_p8 = por %p487_p7, %p486_p6 }
  0x30   :  { %p489_p9 = pnand %p488_p8, %p482_p5 }
  0x32   :  { %492 = shalt.err (!%p489_p9)
}
  0x33   :  { %46 = dma.hbm_to_vmem [thread:$0]  %s611_s2, 4096, %s41_s13, [#allocation6], %s525_s1, %s525_s1, %s526_s9  }
  0x34   :  { %515 = dma.done.wait [#allocation3], 256  }
  0x35   :  { %516 = vsyncadd [#allocation3], 4294967040 }
  0x36   :  { %517 = dma.done.wait [#allocation6], 8192  }
  0x37   :  { %518 = vsyncadd [#allocation6], 4294959104  ;;  %v528_v0 = vmov 0.0   ;;  %v59_v1 = vld [vmem:[#allocation5 + $0x8] sm:$0xff]  ;;  %v61_v2 = vld [vmem:[#allocation5 + $0x18] sm:$0xff]  ;;  %s529_s2 = smov [#allocation8]  }
  0x38   :  { %154 = vmatprep.mubr.f32.mxu0 %v528_v0  ;;  %v58_v3 = vld [vmem:[#allocation5] sm:$0xff]  ;;  %v354_v4 = vpack.c.bf16 %v61_v2, %v59_v1  ;;  %v60_v5 = vld [vmem:[#allocation5 + $0x10] sm:$0xff]  ;;  %v63_v6 = vld [vmem:[#allocation5 + $0x28] sm:$0xff]  ;;  %s303_s23 = sshll.u32 %s529_s2, 4  ;;  %s304_s23 = int_to_ptr.vmem [resolvable:$true] %s303_s23 }
  0x39   :  { %v65_v7 = vld [vmem:[#allocation5 + $0x38] sm:$0xff]  ;;  %v356_v8 = vpack.c.bf16 %v60_v5, %v58_v3  ;;  %v62_v10 = vld [vmem:[#allocation5 + $0x20] sm:$0xff]  ;;  %v64_v11 = vld [vmem:[#allocation5 + $0x30] sm:$0xff]  ;;  %s493_s24 = scalar_lea.vmem %s304_s23, 256  ;;  %p498_p11 = scmp.lt.s32.totalorder %s304_s23, %s304_s23 }
  0x3a   :  { %v358_v9 = vpack.c.bf16 %v65_v7, %v63_v6  ;;  %v67_v12 = vld [vmem:[#allocation5 + $0x48] sm:$0xff]  ;;  %355 = vmatprep.subr.bf16.mxu0 %v354_v4  ;;  %v69_v13 = vld [vmem:[#allocation5 + $0x58] sm:$0xff]  ;;  %v360_v14 = vpack.c.bf16 %v64_v11, %v62_v10  ;;  %v66_v16 = vld [vmem:[#allocation5 + $0x40] sm:$0xff]  ;;  %p494_p10 = scmp.ne.s32.totalorder %s304_s23, %s493_s24  ;;  %p499_p12 = scmp.lt.s32.totalorder %s493_s24, %s493_s24 }
  0x3b   :  { %357 = vmatpush1.bf16.msra.mxu0 %v356_v8  ;;  %v362_v15 = vpack.c.bf16 %v69_v13, %v67_v12  ;;  %v68_v17 = vld [vmem:[#allocation5 + $0x50] sm:$0xff]  ;;  %v71_v18 = vld [vmem:[#allocation5 + $0x68] sm:$0xff]  ;;  %v73_v19 = vld [vmem:[#allocation5 + $0x78] sm:$0xff] }
  0x3c   :  { %359 = vmatprep.subr.bf16.mxu0 %v358_v9  ;;  %v364_v20 = vpack.c.bf16 %v68_v17, %v66_v16  ;;  %v366_v21 = vpack.c.bf16 %v73_v19, %v71_v18  ;;  %v70_v22 = vld [vmem:[#allocation5 + $0x60] sm:$0xff]  ;;  %v72_v23 = vld [vmem:[#allocation5 + $0x70] sm:$0xff]  ;;  %v75_v24 = vld [vmem:[#allocation5 + $0x88] sm:$0xff]  ;;  %p500_p13 = por %p499_p12, %p498_p11 }
  0x3d   :  { %v77_v25 = vld [vmem:[#allocation5 + $0x98] sm:$0xff]  ;;  %v74_v26 = vld [vmem:[#allocation5 + $0x80] sm:$0xff]  ;;  %v76_v27 = vld [vmem:[#allocation5 + $0x90] sm:$0xff]  ;;  %v368_v30 = vpack.c.bf16 %v72_v23, %v70_v22 }
  0x3e   :  { %v191_v28 = vld [vmem:[#allocation7 + $0x80] sm:$0xff]  ;;  %v192_v29 = vld [vmem:[#allocation7 + $0x88] sm:$0xff]  ;;  %v193_v35 = vld [vmem:[#allocation7 + $0x90] sm:$0xff]  ;;  %v370_v36 = vpack.c.bf16 %v77_v25, %v75_v24  ;;  %v372_v46 = vpack.c.bf16 %v76_v27, %v74_v26  ;;  %p501_p0 = pnand %p500_p13, %p494_p10 }
  0x3f   :  { %361 = vmatpush1.bf16.msra.mxu0 %v360_v14  ;;  %v79_v31 = vld [vmem:[#allocation5 + $0xa8] sm:$0xff]  ;;  %v386_v32 = vpack.c.bf16 %v192_v29, %v191_v28  ;;  %v175_v33 = vld [vmem:[#allocation7] sm:$0xff]  ;;  %v194_v38 = vld [vmem:[#allocation7 + $0x98] sm:$0xff] }
  0x40   :  { %363 = vmatprep.subr.bf16.mxu0 %v362_v15  ;;  %v176_v34 = vld [vmem:[#allocation7 + $0x8] sm:$0xff]  ;;  %v177_v39 = vld [vmem:[#allocation7 + $0x10] sm:$0xff]  ;;  %v178_v40 = vld [vmem:[#allocation7 + $0x18] sm:$0xff]  ;;  %v390_v42 = vpack.c.bf16 %v194_v38, %v193_v35 }
  0x41   :  { %v388_v37 = vpack.c.bf16 %v176_v34, %v175_v33  ;;  %v81_v41 = vld [vmem:[#allocation5 + $0xb8] sm:$0xff]  ;;  %387 = vmatprep.subr.bf16.mxu1 %v386_v32  ;;  %v195_v43 = vld [vmem:[#allocation7 + $0xa0] sm:$0xff]  ;;  %v196_v44 = vld [vmem:[#allocation7 + $0xa8] sm:$0xff]  ;;  %v392_v45 = vpack.c.bf16 %v178_v40, %v177_v39 }
  0x42   :  { %v78_v47 = vld [vmem:[#allocation5 + $0xa0] sm:$0xff]  ;;  %v394_v48 = vpack.c.bf16 %v196_v44, %v195_v43  ;;  %v180_v50 = vld [vmem:[#allocation7 + $0x28] sm:$0xff]  ;;  %v374_v51 = vpack.c.bf16 %v81_v41, %v79_v31  ;;  %v80_v52 = vld [vmem:[#allocation5 + $0xb0] sm:$0xff] }
  0x43   :  { %365 = vmatpush1.bf16.msra.mxu0 %v364_v20  ;;  %389 = vmatpush3.bf16.msra.mxu1 %v388_v37  ;;  %v179_v49 = vld [vmem:[#allocation7 + $0x20] sm:$0xff]  ;;  %v197_v53 = vld [vmem:[#allocation7 + $0xb0] sm:$0xff]  ;;  %v198_v54 = vld [vmem:[#allocation7 + $0xb8] sm:$0xff]  ;;  %v376_v58 = vpack.c.bf16 %v80_v52, %v78_v47 }
  0x44   :  { %367 = vmatprep.subr.bf16.mxu0 %v366_v21  ;;  %391 = vmatprep.subr.bf16.mxu1 %v390_v42  ;;  %v83_v55 = vld [vmem:[#allocation5 + $0xc8] sm:$0xff]  ;;  %v85_v56 = vld [vmem:[#allocation5 + $0xd8] sm:$0xff]  ;;  %v396_v57 = vpack.c.bf16 %v180_v50, %v179_v49  ;;  %v82_v59 = vld [vmem:[#allocation5 + $0xc0] sm:$0xff]  ;;  %v398_v60 = vpack.c.bf16 %v198_v54, %v197_v53 }
  0x45   :  { %v181_v61 = vld [vmem:[#allocation7 + $0x30] sm:$0xff]  ;;  %v182_v62 = vld [vmem:[#allocation7 + $0x38] sm:$0xff]  ;;  %v378_v63 = vpack.c.bf16 %v85_v56, %v83_v55  ;;  %v199_v2 = vld [vmem:[#allocation7 + $0xc0] sm:$0xff] }
  0x46   :  { %v84_v1 = vld [vmem:[#allocation5 + $0xd0] sm:$0xff]  ;;  %v200_v3 = vld [vmem:[#allocation7 + $0xc8] sm:$0xff]  ;;  %v89_v5 = vld [vmem:[#allocation5 + $0xf8] sm:$0xff]  ;;  %v400_v6 = vpack.c.bf16 %v182_v62, %v181_v61 }
  0x47   :  { %369 = vmatpush1.bf16.msra.mxu0 %v368_v30  ;;  %393 = vmatpush3.bf16.msra.mxu1 %v392_v45  ;;  %v87_v4 = vld [vmem:[#allocation5 + $0xe8] sm:$0xff]  ;;  %v380_v7 = vpack.c.bf16 %v84_v1, %v82_v59  ;;  %v86_v8 = vld [vmem:[#allocation5 + $0xe0] sm:$0xff]  ;;  %v402_v9 = vpack.c.bf16 %v200_v3, %v199_v2  ;;  %v88_v13 = vld [vmem:[#allocation5 + $0xf0] sm:$0xff] }
  0x48   :  { %371 = vmatprep.subr.bf16.mxu0 %v370_v36  ;;  %395 = vmatprep.subr.bf16.mxu1 %v394_v48  ;;  %v183_v10 = vld [vmem:[#allocation7 + $0x40] sm:$0xff]  ;;  %v184_v11 = vld [vmem:[#allocation7 + $0x48] sm:$0xff]  ;;  %v382_v12 = vpack.c.bf16 %v89_v5, %v87_v4  ;;  %v201_v14 = vld [vmem:[#allocation7 + $0xd0] sm:$0xff]  ;;  %v384_v17 = vpack.c.bf16 %v88_v13, %v86_v8 }
  0x49   :  { %v202_v15 = vld [vmem:[#allocation7 + $0xd8] sm:$0xff]  ;;  %v404_v16 = vpack.c.bf16 %v184_v11, %v183_v10  ;;  %v185_v19 = vld [vmem:[#allocation7 + $0x50] sm:$0xff]  ;;  %v203_v21 = vld [vmem:[#allocation7 + $0xe0] sm:$0xff] }
  0x4a   :  { %v406_v18 = vpack.c.bf16 %v202_v15, %v201_v14  ;;  %v186_v20 = vld [vmem:[#allocation7 + $0x58] sm:$0xff]  ;;  %v204_v22 = vld [vmem:[#allocation7 + $0xe8] sm:$0xff]  ;;  %v56_v24 = vld [vmem:[#allocation2] sm:$0xff] }
  0x4b   :  { %373 = vmatpush1.bf16.msra.mxu0 %v372_v46  ;;  %397 = vmatpush3.bf16.msra.mxu1 %v396_v57  ;;  %v408_v23 = vpack.c.bf16 %v186_v20, %v185_v19  ;;  %v410_v25 = vpack.c.bf16 %v204_v22, %v203_v21  ;;  %v57_v26 = vld [vmem:[#allocation2 + $0x8] sm:$0xff]  ;;  %v187_v27 = vld [vmem:[#allocation7 + $0x60] sm:$0xff]  ;;  %v188_v28 = vld [vmem:[#allocation7 + $0x68] sm:$0xff] }
  0x4c   :  { %375 = vmatprep.subr.bf16.mxu0 %v374_v51  ;;  %399 = vmatprep.subr.bf16.mxu1 %v398_v60  ;;  %v412_v29 = vpack.c.bf16 %v188_v28, %v187_v27  ;;  %v205_v30 = vld [vmem:[#allocation7 + $0xf0] sm:$0xff]  ;;  %v206_v31 = vld [vmem:[#allocation7 + $0xf8] sm:$0xff] }
  0x4d   :  { %v414_v32 = vpack.c.bf16 %v206_v31, %v205_v30  ;;  %v189_v33 = vld [vmem:[#allocation7 + $0x70] sm:$0xff]  ;;  %v190_v34 = vld [vmem:[#allocation7 + $0x78] sm:$0xff] }
  0x4e   :  { %v416_v35 = vpack.c.bf16 %v190_v34, %v189_v33 }
  0x4f   :  { %377 = vmatpush1.bf16.msra.mxu0 %v376_v58  ;;  %401 = vmatpush3.bf16.msra.mxu1 %v400_v6 }
  0x50   :  { %379 = vmatprep.subr.bf16.mxu0 %v378_v63  ;;  %403 = vmatprep.subr.bf16.mxu1 %v402_v9 }
  0x53   :  { %381 = vmatpush1.bf16.msra.mxu0 %v380_v7  ;;  %405 = vmatpush3.bf16.msra.mxu1 %v404_v16 }
  0x54   :  { %383 = vmatprep.subr.bf16.mxu0 %v382_v12  ;;  %407 = vmatprep.subr.bf16.mxu1 %v406_v18 }
  0x57   :  { %385 = vmatpush1.bf16.msra.mxu0 %v384_v17  ;;  %409 = vmatpush3.bf16.msra.mxu1 %v408_v23 }
  0x58   :  { %411 = vmatprep.subr.bf16.mxu1 %v410_v25 }
  0x5a   :  { %155 = vmatmul.mubr.f32.vlgmr.msra.gmra.mrb[0].mxu0 %v56_v24 }
  0x5b   :  { %160 = vmatprep.mubr.f32.mxu0 %v528_v0  ;;  %413 = vmatpush3.bf16.msra.mxu1 %v412_v29 }
  0x5c   :  { %415 = vmatprep.subr.bf16.mxu1 %v414_v32 }
  0x5e   :  { %161 = vmatmul.mubr.f32.gmra.mrb[2].mxu0 %v57_v26 }
  0x5f   :  { %417 = vmatpush3.bf16.msra.mxu1 %v416_v35 }
 0x12d   :  { %v156_v36 = vpop.f32.mrb[0].mxu0 }
 0x12e   :  { %v167_v37 = vmax.f32 %v156_v36, 0.0  ;;  %v158_v38 = vpop.f32.mrb[1].mxu0 }
 0x12f   :  { %v168_v39 = vmax.f32 %v158_v38, 0.0 }
 0x130   :  { %v171_v41 = vmul.f32 %v167_v37, %v167_v37 }
 0x131   :  { %v162_v0 = vpop.f32.mrb[2].mxu0  ;;  %v172_v40 = vmul.f32 %v168_v39, %v168_v39 }
 0x132   :  { %v169_v42 = vmax.f32 %v162_v0, 0.0  ;;  %v164_v43 = vpop.f32.mrb[3].mxu0 }
 0x133   :  { %v170_v44 = vmax.f32 %v164_v43, 0.0  ;;  %271 = vmatprep.mubr.f32.mxu1 %v172_v40 }
 0x134   :  { %272 = vmatmul.mubr.f32.vlgmr.msra.gmra.mrb[0].mxu1 %v171_v41  ;;  %v173_v46 = vmul.f32 %v169_v42, %v169_v42 }
 0x135   :  { %v174_v45 = vmul.f32 %v170_v44, %v170_v44 }
 0x137   :  { %276 = vmatprep.mubr.f32.mxu1 %v174_v45 }
 0x138   :  { %277 = vmatmul.mubr.f32.gmra.mrb[2].mxu1 %v173_v46 }
 0x207   :  { %v348_v47 = vpop.f32.mrb[0].mxu1 }
 0x208   :  { %v349_v48 = vpop.f32.mrb[1].mxu1 }
 0x209   :  { %v350_v49 = vadd.f32 %v349_v48, %v348_v47 }
 0x20b   :  { %286 = vst [vmem:[#allocation8] sm:$0xff] %v350_v49  ;;  %v351_v50 = vpop.f32.mrb[2].mxu1 }
 0x20c   :  { %v352_v51 = vpop.f32.mrb[3].mxu1 }
 0x20d   :  { %v353_v52 = vadd.f32 %v352_v51, %v351_v50 }
 0x20f   :  { %287 = vst [vmem:[#allocation8 + $0x8] sm:$0xff] %v353_v52 }
 0x210   :  { %504 = shalt.err (!%p501_p0)
}
 0x211   :  { %s505_s27 = scalar_lea.hbm %s612_s3, 256 }
 0x212   :  { %p506_p1 = scmp.ne.s32.totalorder %s612_s3, %s505_s27  ;;  %p509_p2 = scmp.lt.u32.totalorder %s505_s27, %s612_s3 }
 0x214   :  { %p511_p3 = pnand %p509_p2, %p506_p1 }
 0x216   :  { %514 = shalt.err (!%p511_p3)
}
 0x217   :  { %309 = dma.vmem_to_hbm [thread:$0]  %s304_s23, 256, %s612_s3, [#allocation4], %s525_s1, %s525_s1, %s526_s9  }
 0x218   :  { %519 = dma.done.wait [#allocation4], 256  }
 0x219   :  { %520 = vsyncadd [#allocation4], 4294967040 }
 0x21a   :  { %313 = vsyncpa [#allocation3], 1 }
 0x21b   :  { %314 = vsyncpa [#allocation6], 1 }
 0x21c   :  { %315 = vsyncpa [#allocation4], 1 }

// kernel: tpu_custom_call.1
= control target key start
LH: loop header
LB: loop body
LE: loop exit
PB: predicated region body
PF: predicated region fallthrough
CT: control target
= control target key end

     0   :  { %8 = vsyncpa [#allocation3], 0  ;;  %s609_s0 = inlined_call_operand.hbm [shape: f32[16,128], index: 0, kind: input, shape index: {}]   ;;  %s610_s1 = inlined_call_operand.hbm [shape: f32[128,256], index: 1, kind: input, shape index: {}]   ;;  %s611_s2 = inlined_call_operand.hbm [shape: f32[256,128], index: 2, kind: input, shape index: {}]   ;;  %s612_s3 = inlined_call_operand.hbm [shape: f32[16,128], index: 3, kind: output, shape index: {}]  }
   0x1   :  { %9 = vsyncpa [#allocation6], 0 }
   0x2   :  { %10 = vsyncpa [#allocation4], 0  ;;  %s521_s12 = smov [#allocation5]   ;;  %s427_s16 = scalar_lea.hbm %s610_s1, 4096 }
   0x3   :  { %s28_s13 = sshll.u32 %s521_s12, 4  ;;  %p428_p0 = scmp.ne.s32.totalorder %s610_s1, %s427_s16  ;;  %s29_s13 = int_to_ptr.vmem [resolvable:$true] %s28_s13 }
   0x4   :  { %p431_p1 = scmp.lt.u32.totalorder %s427_s16, %s610_s1 }
   0x6   :  { %p433_p2 = pnand %p431_p1, %p428_p0 }
   0x8   :  { %436 = shalt.err (!%p433_p2)
}
   0x9   :  { %s437_s21 = scalar_lea.vmem %s29_s13, 4096  ;;  %p442_p4 = scmp.lt.s32.totalorder %s29_s13, %s29_s13 }
   0xa   :  { %p438_p3 = scmp.ne.s32.totalorder %s29_s13, %s437_s21  ;;  %p443_p5 = scmp.lt.s32.totalorder %s437_s21, %s437_s21 }
   0xc   :  { %p444_p6 = por %p443_p5, %p442_p4 }
   0xe   :  { %p445_p7 = pnand %p444_p6, %p438_p3 }
  0x10   :  { %448 = shalt.err (!%p445_p7)
}
  0x11   :  { %s522_s22 = smov 256   ;;  %s523_s23 = smov 16  }
  0x12   :  { %34 = dma.hbm_to_vmem [thread:$0]  %s610_s1, 4096, %s29_s13, [#allocation6], %s522_s22, %s522_s22, %s523_s23  }
  0x13   :  { %s524_s26 = smov [#allocation2]   ;;  %s449_s30 = scalar_lea.hbm %s609_s0, 256 }
  0x14   :  { %s16_s27 = sshll.u32 %s524_s26, 4  ;;  %p450_p8 = scmp.ne.s32.totalorder %s609_s0, %s449_s30  ;;  %s17_s27 = int_to_ptr.vmem [resolvable:$true] %s16_s27 }
  0x15   :  { %p453_p9 = scmp.lt.u32.totalorder %s449_s30, %s609_s0 }
  0x17   :  { %p455_p10 = pnand %p453_p9, %p450_p8 }
  0x19   :  { %458 = shalt.err (!%p455_p10)
}
  0x1a   :  { %s459_s8 = scalar_lea.vmem %s17_s27, 256  ;;  %p464_p12 = scmp.lt.s32.totalorder %s17_s27, %s17_s27 }
  0x1b   :  { %p460_p11 = scmp.ne.s32.totalorder %s17_s27, %s459_s8  ;;  %p465_p13 = scmp.lt.s32.totalorder %s459_s8, %s459_s8 }
  0x1d   :  { %p466_p0 = por %p465_p13, %p464_p12 }
  0x1f   :  { %p467_p1 = pnand %p466_p0, %p460_p11 }
  0x21   :  { %470 = shalt.err (!%p467_p1)
}
  0x22   :  { %s525_s1 = smov 128   ;;  %s526_s9 = smov 8  }
  0x23   :  { %22 = dma.hbm_to_vmem [thread:$0]  %s609_s0, 256, %s17_s27, [#allocation3], %s525_s1, %s525_s1, %s526_s9  }
  0x24   :  { %s527_s12 = smov [#allocation7]   ;;  %s471_s16 = scalar_lea.hbm %s611_s2, 4096 }
  0x25   :  { %s40_s13 = sshll.u32 %s527_s12, 4  ;;  %p472_p2 = scmp.ne.s32.totalorder %s611_s2, %s471_s16  ;;  %s41_s13 = int_to_ptr.vmem [resolvable:$true] %s40_s13 }
  0x26   :  { %p475_p3 = scmp.lt.u32.totalorder %s471_s16, %s611_s2 }
  0x28   :  { %p477_p4 = pnand %p475_p3, %p472_p2 }
  0x2a   :  { %480 = shalt.err (!%p477_p4)
}
  0x2b   :  { %s481_s21 = scalar_lea.vmem %s41_s13, 4096  ;;  %p486_p6 = scmp.lt.s32.totalorder %s41_s13, %s41_s13 }
  0x2c   :  { %p482_p5 = scmp.ne.s32.totalorder %s41_s13, %s481_s21  ;;  %p487_p7 = scmp.lt.s32.totalorder %s481_s21, %s481_s21 }
  0x2e   :  { %p488_p8 = por %p487_p7, %p486_p6 }
  0x30   :  { %p489_p9 = pnand %p488_p8, %p482_p5 }
  0x32   :  { %492 = shalt.err (!%p489_p9)
}
  0x33   :  { %46 = dma.hbm_to_vmem [thread:$0]  %s611_s2, 4096, %s41_s13, [#allocation6], %s525_s1, %s525_s1, %s526_s9  }
  0x34   :  { %515 = dma.done.wait [#allocation3], 256  }
  0x35   :  { %516 = vsyncadd [#allocation3], 4294967040 }
  0x36   :  { %517 = dma.done.wait [#allocation6], 8192  }
  0x37   :  { %518 = vsyncadd [#allocation6], 4294959104  ;;  %v528_v0 = vmov 0.0   ;;  %v59_v1 = vld [vmem:[#allocation5 + $0x8] sm:$0xff]  ;;  %v61_v2 = vld [vmem:[#allocation5 + $0x18] sm:$0xff]  ;;  %s529_s2 = smov [#allocation8]  }
  0x38   :  { %154 = vmatprep.mubr.f32.mxu0 %v528_v0  ;;  %v58_v3 = vld [vmem:[#allocation5] sm:$0xff]  ;;  %v354_v4 = vpack.c.bf16 %v61_v2, %v59_v1  ;;  %v60_v5 = vld [vmem:[#allocation5 + $0x10] sm:$0xff]  ;;  %v63_v6 = vld [vmem:[#allocation5 + $0x28] sm:$0xff]  ;;  %s303_s23 = sshll.u32 %s529_s2, 4  ;;  %s304_s23 = int_to_ptr.vmem [resolvable:$true] %s303_s23 }
  0x39   :  { %v65_v7 = vld [vmem:[#allocation5 + $0x38] sm:$0xff]  ;;  %v356_v8 = vpack.c.bf16 %v60_v5, %v58_v3  ;;  %v62_v10 = vld [vmem:[#allocation5 + $0x20] sm:$0xff]  ;;  %v64_v11 = vld [vmem:[#allocation5 + $0x30] sm:$0xff]  ;;  %s493_s24 = scalar_lea.vmem %s304_s23, 256  ;;  %p498_p11 = scmp.lt.s32.totalorder %s304_s23, %s304_s23 }
  0x3a   :  { %v358_v9 = vpack.c.bf16 %v65_v7, %v63_v6  ;;  %v67_v12 = vld [vmem:[#allocation5 + $0x48] sm:$0xff]  ;;  %355 = vmatprep.subr.bf16.mxu0 %v354_v4  ;;  %v69_v13 = vld [vmem:[#allocation5 + $0x58] sm:$0xff]  ;;  %v360_v14 = vpack.c.bf16 %v64_v11, %v62_v10  ;;  %v66_v16 = vld [vmem:[#allocation5 + $0x40] sm:$0xff]  ;;  %p494_p10 = scmp.ne.s32.totalorder %s304_s23, %s493_s24  ;;  %p499_p12 = scmp.lt.s32.totalorder %s493_s24, %s493_s24 }
  0x3b   :  { %357 = vmatpush1.bf16.msra.mxu0 %v356_v8  ;;  %v362_v15 = vpack.c.bf16 %v69_v13, %v67_v12  ;;  %v68_v17 = vld [vmem:[#allocation5 + $0x50] sm:$0xff]  ;;  %v71_v18 = vld [vmem:[#allocation5 + $0x68] sm:$0xff]  ;;  %v73_v19 = vld [vmem:[#allocation5 + $0x78] sm:$0xff] }
  0x3c   :  { %359 = vmatprep.subr.bf16.mxu0 %v358_v9  ;;  %v364_v20 = vpack.c.bf16 %v68_v17, %v66_v16  ;;  %v366_v21 = vpack.c.bf16 %v73_v19, %v71_v18  ;;  %v70_v22 = vld [vmem:[#allocation5 + $0x60] sm:$0xff]  ;;  %v72_v23 = vld [vmem:[#allocation5 + $0x70] sm:$0xff]  ;;  %v75_v24 = vld [vmem:[#allocation5 + $0x88] sm:$0xff]  ;;  %p500_p13 = por %p499_p12, %p498_p11 }
  0x3d   :  { %v77_v25 = vld [vmem:[#allocation5 + $0x98] sm:$0xff]  ;;  %v74_v26 = vld [vmem:[#allocation5 + $0x80] sm:$0xff]  ;;  %v76_v27 = vld [vmem:[#allocation5 + $0x90] sm:$0xff]  ;;  %v368_v30 = vpack.c.bf16 %v72_v23, %v70_v22 }
  0x3e   :  { %v191_v28 = vld [vmem:[#allocation7 + $0x80] sm:$0xff]  ;;  %v192_v29 = vld [vmem:[#allocation7 + $0x88] sm:$0xff]  ;;  %v193_v35 = vld [vmem:[#allocation7 + $0x90] sm:$0xff]  ;;  %v370_v36 = vpack.c.bf16 %v77_v25, %v75_v24  ;;  %v372_v46 = vpack.c.bf16 %v76_v27, %v74_v26  ;;  %p501_p0 = pnand %p500_p13, %p494_p10 }
  0x3f   :  { %361 = vmatpush1.bf16.msra.mxu0 %v360_v14  ;;  %v79_v31 = vld [vmem:[#allocation5 + $0xa8] sm:$0xff]  ;;  %v386_v32 = vpack.c.bf16 %v192_v29, %v191_v28  ;;  %v175_v33 = vld [vmem:[#allocation7] sm:$0xff]  ;;  %v194_v38 = vld [vmem:[#allocation7 + $0x98] sm:$0xff] }
  0x40   :  { %363 = vmatprep.subr.bf16.mxu0 %v362_v15  ;;  %v176_v34 = vld [vmem:[#allocation7 + $0x8] sm:$0xff]  ;;  %v177_v39 = vld [vmem:[#allocation7 + $0x10] sm:$0xff]  ;;  %v178_v40 = vld [vmem:[#allocation7 + $0x18] sm:$0xff]  ;;  %v390_v42 = vpack.c.bf16 %v194_v38, %v193_v35 }
  0x41   :  { %v388_v37 = vpack.c.bf16 %v176_v34, %v175_v33  ;;  %v81_v41 = vld [vmem:[#allocation5 + $0xb8] sm:$0xff]  ;;  %387 = vmatprep.subr.bf16.mxu1 %v386_v32  ;;  %v195_v43 = vld [vmem:[#allocation7 + $0xa0] sm:$0xff]  ;;  %v196_v44 = vld [vmem:[#allocation7 + $0xa8] sm:$0xff]  ;;  %v392_v45 = vpack.c.bf16 %v178_v40, %v177_v39 }
  0x42   :  { %v78_v47 = vld [vmem:[#allocation5 + $0xa0] sm:$0xff]  ;;  %v394_v48 = vpack.c.bf16 %v196_v44, %v195_v43  ;;  %v180_v50 = vld [vmem:[#allocation7 + $0x28] sm:$0xff]  ;;  %v374_v51 = vpack.c.bf16 %v81_v41, %v79_v31  ;;  %v80_v52 = vld [vmem:[#allocation5 + $0xb0] sm:$0xff] }
  0x43   :  { %365 = vmatpush1.bf16.msra.mxu0 %v364_v20  ;;  %389 = vmatpush3.bf16.msra.mxu1 %v388_v37  ;;  %v179_v49 = vld [vmem:[#allocation7 + $0x20] sm:$0xff]  ;;  %v197_v53 = vld [vmem:[#allocation7 + $0xb0] sm:$0xff]  ;;  %v198_v54 = vld [vmem:[#allocation7 + $0xb8] sm:$0xff]  ;;  %v376_v58 = vpack.c.bf16 %v80_v52, %v78_v47 }
  0x44   :  { %367 = vmatprep.subr.bf16.mxu0 %v366_v21  ;;  %391 = vmatprep.subr.bf16.mxu1 %v390_v42  ;;  %v83_v55 = vld [vmem:[#allocation5 + $0xc8] sm:$0xff]  ;;  %v85_v56 = vld [vmem:[#allocation5 + $0xd8] sm:$0xff]  ;;  %v396_v57 = vpack.c.bf16 %v180_v50, %v179_v49  ;;  %v82_v59 = vld [vmem:[#allocation5 + $0xc0] sm:$0xff]  ;;  %v398_v60 = vpack.c.bf16 %v198_v54, %v197_v53 }
  0x45   :  { %v181_v61 = vld [vmem:[#allocation7 + $0x30] sm:$0xff]  ;;  %v182_v62 = vld [vmem:[#allocation7 + $0x38] sm:$0xff]  ;;  %v378_v63 = vpack.c.bf16 %v85_v56, %v83_v55  ;;  %v199_v2 = vld [vmem:[#allocation7 + $0xc0] sm:$0xff] }
  0x46   :  { %v84_v1 = vld [vmem:[#allocation5 + $0xd0] sm:$0xff]  ;;  %v200_v3 = vld [vmem:[#allocation7 + $0xc8] sm:$0xff]  ;;  %v89_v5 = vld [vmem:[#allocation5 + $0xf8] sm:$0xff]  ;;  %v400_v6 = vpack.c.bf16 %v182_v62, %v181_v61 }
  0x47   :  { %369 = vmatpush1.bf16.msra.mxu0 %v368_v30  ;;  %393 = vmatpush3.bf16.msra.mxu1 %v392_v45  ;;  %v87_v4 = vld [vmem:[#allocation5 + $0xe8] sm:$0xff]  ;;  %v380_v7 = vpack.c.bf16 %v84_v1, %v82_v59  ;;  %v86_v8 = vld [vmem:[#allocation5 + $0xe0] sm:$0xff]  ;;  %v402_v9 = vpack.c.bf16 %v200_v3, %v199_v2  ;;  %v88_v13 = vld [vmem:[#allocation5 + $0xf0] sm:$0xff] }
  0x48   :  { %371 = vmatprep.subr.bf16.mxu0 %v370_v36  ;;  %395 = vmatprep.subr.bf16.mxu1 %v394_v48  ;;  %v183_v10 = vld [vmem:[#allocation7 + $0x40] sm:$0xff]  ;;  %v184_v11 = vld [vmem:[#allocation7 + $0x48] sm:$0xff]  ;;  %v382_v12 = vpack.c.bf16 %v89_v5, %v87_v4  ;;  %v201_v14 = vld [vmem:[#allocation7 + $0xd0] sm:$0xff]  ;;  %v384_v17 = vpack.c.bf16 %v88_v13, %v86_v8 }
  0x49   :  { %v202_v15 = vld [vmem:[#allocation7 + $0xd8] sm:$0xff]  ;;  %v404_v16 = vpack.c.bf16 %v184_v11, %v183_v10  ;;  %v185_v19 = vld [vmem:[#allocation7 + $0x50] sm:$0xff]  ;;  %v203_v21 = vld [vmem:[#allocation7 + $0xe0] sm:$0xff] }
  0x4a   :  { %v406_v18 = vpack.c.bf16 %v202_v15, %v201_v14  ;;  %v186_v20 = vld [vmem:[#allocation7 + $0x58] sm:$0xff]  ;;  %v204_v22 = vld [vmem:[#allocation7 + $0xe8] sm:$0xff]  ;;  %v56_v24 = vld [vmem:[#allocation2] sm:$0xff] }
  0x4b   :  { %373 = vmatpush1.bf16.msra.mxu0 %v372_v46  ;;  %397 = vmatpush3.bf16.msra.mxu1 %v396_v57  ;;  %v408_v23 = vpack.c.bf16 %v186_v20, %v185_v19  ;;  %v410_v25 = vpack.c.bf16 %v204_v22, %v203_v21  ;;  %v57_v26 = vld [vmem:[#allocation2 + $0x8] sm:$0xff]  ;;  %v187_v27 = vld [vmem:[#allocation7 + $0x60] sm:$0xff]  ;;  %v188_v28 = vld [vmem:[#allocation7 + $0x68] sm:$0xff] }
  0x4c   :  { %375 = vmatprep.subr.bf16.mxu0 %v374_v51  ;;  %399 = vmatprep.subr.bf16.mxu1 %v398_v60  ;;  %v412_v29 = vpack.c.bf16 %v188_v28, %v187_v27  ;;  %v205_v30 = vld [vmem:[#allocation7 + $0xf0] sm:$0xff]  ;;  %v206_v31 = vld [vmem:[#allocation7 + $0xf8] sm:$0xff] }
  0x4d   :  { %v414_v32 = vpack.c.bf16 %v206_v31, %v205_v30  ;;  %v189_v33 = vld [vmem:[#allocation7 + $0x70] sm:$0xff]  ;;  %v190_v34 = vld [vmem:[#allocation7 + $0x78] sm:$0xff] }
  0x4e   :  { %v416_v35 = vpack.c.bf16 %v190_v34, %v189_v33 }
  0x4f   :  { %377 = vmatpush1.bf16.msra.mxu0 %v376_v58  ;;  %401 = vmatpush3.bf16.msra.mxu1 %v400_v6 }
  0x50   :  { %379 = vmatprep.subr.bf16.mxu0 %v378_v63  ;;  %403 = vmatprep.subr.bf16.mxu1 %v402_v9 }
  0x53   :  { %381 = vmatpush1.bf16.msra.mxu0 %v380_v7  ;;  %405 = vmatpush3.bf16.msra.mxu1 %v404_v16 }
  0x54   :  { %383 = vmatprep.subr.bf16.mxu0 %v382_v12  ;;  %407 = vmatprep.subr.bf16.mxu1 %v406_v18 }
  0x57   :  { %385 = vmatpush1.bf16.msra.mxu0 %v384_v17  ;;  %409 = vmatpush3.bf16.msra.mxu1 %v408_v23 }
  0x58   :  { %411 = vmatprep.subr.bf16.mxu1 %v410_v25 }
  0x5a   :  { %155 = vmatmul.mubr.f32.vlgmr.msra.gmra.mrb[0].mxu0 %v56_v24 }
  0x5b   :  { %160 = vmatprep.mubr.f32.mxu0 %v528_v0  ;;  %413 = vmatpush3.bf16.msra.mxu1 %v412_v29 }
  0x5c   :  { %415 = vmatprep.subr.bf16.mxu1 %v414_v32 }
  0x5e   :  { %161 = vmatmul.mubr.f32.gmra.mrb[2].mxu0 %v57_v26 }
  0x5f   :  { %417 = vmatpush3.bf16.msra.mxu1 %v416_v35 }
 0x12d   :  { %v156_v36 = vpop.f32.mrb[0].mxu0 }
 0x12e   :  { %v167_v37 = vmax.f32 %v156_v36, 0.0  ;;  %v158_v38 = vpop.f32.mrb[1].mxu0 }
 0x12f   :  { %v168_v39 = vmax.f32 %v158_v38, 0.0 }
 0x130   :  { %v171_v41 = vmul.f32 %v167_v37, %v167_v37 }
 0x131   :  { %v162_v0 = vpop.f32.mrb[2].mxu0  ;;  %v172_v40 = vmul.f32 %v168_v39, %v168_v39 }
 0x132   :  { %v169_v42 = vmax.f32 %v162_v0, 0.0  ;;  %v164_v43 = vpop.f32.mrb[3].mxu0 }
 0x133   :  { %v170_v44 = vmax.f32 %v164_v43, 0.0  ;;  %271 = vmatprep.mubr.f32.mxu1 %v172_v40 }
 0x134   :  { %272 = vmatmul.mubr.f32.vlgmr.msra.gmra.mrb[0].mxu1 %v171_v41  ;;  %v173_v46 = vmul.f32 %v169_v42, %v169_v42 }
 0x135   :  { %v174_v45 = vmul.f32 %v170_v44, %v170_v44 }
 0x137   :  { %276 = vmatprep.mubr.f32.mxu1 %v174_v45 }
 0x138   :  { %277 = vmatmul.mubr.f32.gmra.mrb[2].mxu1 %v173_v46 }
 0x207   :  { %v348_v47 = vpop.f32.mrb[0].mxu1 }
 0x208   :  { %v349_v48 = vpop.f32.mrb[1].mxu1 }
 0x209   :  { %v350_v49 = vadd.f32 %v349_v48, %v348_v47 }
 0x20b   :  { %286 = vst [vmem:[#allocation8] sm:$0xff] %v350_v49  ;;  %v351_v50 = vpop.f32.mrb[2].mxu1 }
 0x20c   :  { %v352_v51 = vpop.f32.mrb[3].mxu1 }
 0x20d   :  { %v353_v52 = vadd.f32 %v352_v51, %v351_v50 }
 0x20f   :  { %287 = vst [vmem:[#allocation8 + $0x8] sm:$0xff] %v353_v52 }
 0x210   :  { %504 = shalt.err (!%p501_p0)
}
 0x211   :  { %s505_s27 = scalar_lea.hbm %s612_s3, 256 }
 0x212   :  { %p506_p1 = scmp.ne.s32.totalorder %s612_s3, %s505_s27  ;;  %p509_p2 = scmp.lt.u32.totalorder %s505_s27, %s612_s3 }
 0x214   :  { %p511_p3 = pnand %p509_p2, %p506_p1 }
 0x216   :  { %514 = shalt.err (!%p511_p3)
}
 0x217   :  { %309 = dma.vmem_to_hbm [thread:$0]  %s304_s23, 256, %s612_s3, [#allocation4], %s525_s1, %s525_s1, %s526_s9  }
 0x218   :  { %519 = dma.done.wait [#allocation4], 256  }
 0x219   :  { %520 = vsyncadd [#allocation4], 4294967040 }
 0x21a   :  { %313 = vsyncpa [#allocation3], 1 }
 0x21b   :  { %314 = vsyncpa [#allocation6], 1 }
 0x21c   :  { %315 = vsyncpa [#allocation4], 1 }

</bundles_post_ra>
